<compile_context>
chip_gen: v6e
topology: v6e:2x2x1
jax: 0.10.0
libtpu: 0.0.40
codegen_flags: <defaults>
</compile_context>

<pallas_src>
import math

import jax
import jax.numpy as jnp
from jax.experimental import pallas as pl
from jax.experimental.pallas import tpu as pltpu


def _round_up(x, m):
    return ((x + m - 1) // m) * m


# --------------------------------------------------------------------------
# Kernels
# --------------------------------------------------------------------------
def _linear_kernel_single_k(x_ref, w_ref, b_ref, o_ref):
    """Whole K in one step: o = x @ w + b (no accumulator scratch needed)."""
    acc = jnp.dot(x_ref[...], w_ref[...], preferred_element_type=jnp.float32)
    o_ref[...] = (acc + b_ref[...].astype(jnp.float32)).astype(o_ref.dtype)


def _linear_kernel_multi_k(x_ref, w_ref, b_ref, o_ref, acc_ref):
    """K tiled on the last ('arbitrary') grid axis; f32 VMEM accumulator."""
    k = pl.program_id(2)

    @pl.when(k == 0)
    def _():
        # Fold the bias add into the accumulator init.
        acc_ref[...] = jnp.broadcast_to(
            b_ref[...].astype(jnp.float32), acc_ref.shape)

    acc_ref[...] += jnp.dot(x_ref[...], w_ref[...],
                            preferred_element_type=jnp.float32)

    @pl.when(k == pl.num_programs(2) - 1)
    def _():
        o_ref[...] = acc_ref[...].astype(o_ref.dtype)


# --------------------------------------------------------------------------
# Tile selection (per TPU generation)
# --------------------------------------------------------------------------
def _tile_config(m, n, k):
    """Returns (tm, tn, tk, vmem_limit_cap_bytes)."""
    try:
        cap = int(getattr(pltpu.get_tpu_info(), "vmem_capacity_bytes", 0) or 0)
    except Exception:  # pragma: no cover - conservative fallback
        cap = 0

    if cap >= (96 << 20):
        # v5e / v6e class: 128 MiB VMEM per TensorCore, 1 TC per chip.
        tm_max, tn_max, tk_max = 1536, 1536, 2048
        limit_cap = 100 << 20
        two_cores = False
    else:
        # v7x class (64 MiB VMEM, 2 TCs per chip) or unknown -> conservative.
        tm_max, tn_max, tk_max = 1024, 1024, 1024
        limit_cap = 48 << 20
        two_cores = True

    # Clamp to the problem: block dim == full array dim is always legal,
    # otherwise the maxima are multiples of (8, 128) as required.
    tm = m if m <= tm_max else tm_max
    tn = n if n <= tn_max else tn_max
    tk = k if k <= tk_max else tk_max

    # v7x shards the parallel grid axes across its 2 TensorCores: expose at
    # least two parallel tiles when the problem is big enough to benefit.
    if two_cores and pl.cdiv(m, tm) * pl.cdiv(n, tn) < 2:
        if n >= 256:
            tn = _round_up(pl.cdiv(n, 2), 128)
        elif m >= 256:
            tm = _round_up(pl.cdiv(m, 2), 8)

    return tm, tn, tk, limit_cap


# --------------------------------------------------------------------------
# Wrapper
# --------------------------------------------------------------------------
def linear_forward(x, weight, bias, *, compute_dtype=jnp.bfloat16):
    """Equivalent of torch.nn.functional.linear(x, weight, bias).

    x:      [..., in_features]
    weight: [out_features, in_features]  (native PyTorch layout)
    bias:   [out_features]
    returns [..., out_features] in x.dtype (f32 accumulation on the MXU).
    """
    out_features, in_features = weight.shape
    assert x.shape[-1] == in_features

    lead_shape = x.shape[:-1]
    m = math.prod(lead_shape) if lead_shape else 1
    out_dtype = x.dtype
    if m == 0:
        return jnp.zeros((*lead_shape, out_features), out_dtype)

    # bf16 MXU path (keep f32 accumulation). Non-f32 inputs keep their dtype.
    cdt = compute_dtype if (compute_dtype is not None
                            and x.dtype == jnp.float32) else x.dtype

    x2d = x.reshape(m, in_features).astype(cdt)
    # One-time [K, N] weight layout (fused with the cast by XLA): the kernel
    # contraction is then a plain NN matmul -> no per-tile XLU transpose.
    w_kn = weight.T.astype(cdt)
    b2d = bias.reshape(1, out_features).astype(jnp.float32)

    tm, tn, tk, limit_cap = _tile_config(m, out_features, in_features)

    single_k = in_features <= tk
    if single_k:
        tk = in_features
        nk = 1
        kp = in_features
    else:
        nk = pl.cdiv(in_features, tk)
        kp = nk * tk
        if kp != in_features:
            # Only the K tail must be zero-padded for correctness; ragged
            # M / N are handled by the cdiv grid (OOB writes are dropped).
            x2d = jnp.pad(x2d, ((0, 0), (0, kp - in_features)))
            w_kn = jnp.pad(w_kn, ((0, kp - in_features), (0, 0)))

    gm, gn = pl.cdiv(m, tm), pl.cdiv(out_features, tn)

    in_itemsize = jnp.dtype(cdt).itemsize
    out_itemsize = jnp.dtype(out_dtype).itemsize

    # Advisory cost, counting the re-streaming of x (per N tile) and w (per
    # M tile).
    cost = pl.CostEstimate(
        flops=2 * m * out_features * kp,
        transcendentals=0,
        bytes_accessed=int(m * kp * in_itemsize * gn
                           + kp * out_features * in_itemsize * gm
                           + out_features * 4 * gm
                           + m * out_features * out_itemsize),
    )

    # Double-buffered x/w/out tiles + f32 accumulator + bias, with headroom,
    # capped per generation (stays well under physical VMEM).
    footprint = (2 * (tm * tk + tk * tn) * in_itemsize
                 + 2 * tm * tn * out_itemsize
                 + tm * tn * 4
                 + 2 * tn * 4)
    vmem_limit = int(min(limit_cap, max(32 << 20, int(footprint * 1.5))))

    if single_k:
        grid_spec = pltpu.PrefetchScalarGridSpec(
            num_scalar_prefetch=0,
            grid=(gm, gn),
            in_specs=[
                pl.BlockSpec((tm, tk), lambda i, j: (i, 0)),   # x  [M, K]
                pl.BlockSpec((tk, tn), lambda i, j: (0, j)),   # w  [K, N]
                pl.BlockSpec((1, tn), lambda i, j: (0, j)),    # bias [1, N]
            ],
            out_specs=pl.BlockSpec((tm, tn), lambda i, j: (i, j)),
        )
        kernel = _linear_kernel_single_k
        dim_sem = ("parallel", "parallel")
    else:
        grid_spec = pltpu.PrefetchScalarGridSpec(
            num_scalar_prefetch=0,
            grid=(gm, gn, nk),
            in_specs=[
                pl.BlockSpec((tm, tk), lambda i, j, k: (i, k)),  # x  [M, Kp]
                pl.BlockSpec((tk, tn), lambda i, j, k: (k, j)),  # w  [Kp, N]
                pl.BlockSpec((1, tn), lambda i, j, k: (0, j)),   # bias [1, N]
            ],
            out_specs=pl.BlockSpec((tm, tn), lambda i, j, k: (i, j)),
            scratch_shapes=[pltpu.VMEM((tm, tn), jnp.float32)],
        )
        kernel = _linear_kernel_multi_k
        dim_sem = ("parallel", "parallel", "arbitrary")

    out = pl.pallas_call(
        kernel,
        out_shape=jax.ShapeDtypeStruct((m, out_features), out_dtype),
        grid_spec=grid_spec,
        compiler_params=pltpu.CompilerParams(
            dimension_semantics=dim_sem,
            vmem_limit_bytes=vmem_limit,
        ),
        cost_estimate=cost,
    )(x2d, w_kn, b2d)

    return out.reshape(*lead_shape, out_features)


if __name__ == "__main__":
    key = jax.random.PRNGKey(0)
    k_x, k_w = jax.random.split(key)

    in_features = 32
    out_features = 64
    batch, seq = 2, 8

    # Deterministic parameter init mirroring the PyTorch module:
    #   nn.init.uniform_(weight) -> U[0, 1);  nn.init.constant_(bias, 0.0)
    weight = jax.random.uniform(k_w, (out_features, in_features), dtype=jnp.float32)
    bias = jnp.zeros((out_features,), dtype=jnp.float32)

    x = jax.random.normal(k_x, (batch, seq, in_features), dtype=jnp.float32)

    y = jax.block_until_ready(linear_forward(x, weight, bias))

    # Reference 1: same bf16-input / f32-accumulate regime as the kernel.
    xb = x.astype(jnp.bfloat16).astype(jnp.float32)
    wb = weight.astype(jnp.bfloat16).astype(jnp.float32)
    y_ref_bf16 = jnp.dot(
        xb.reshape(-1, in_features), wb.T,
        precision=jax.lax.Precision.HIGHEST,
    ).reshape(batch, seq, out_features) + bias
    # Reference 2: plain f32 reference (looser tolerance due to bf16 inputs).
    y_ref_f32 = x @ weight.T + bias

    assert y.shape == (batch, seq, out_features)
    assert y.dtype == x.dtype
    assert jnp.allclose(y, y_ref_bf16, atol=1e-3, rtol=1e-3)
    assert jnp.allclose(y, y_ref_f32, atol=5e-2, rtol=5e-2)

    print("KERNEL_OK")
</pallas_src>

<mosaic_0001>
module attributes {stable_mosaic.version = 11 : i64} {
  func.func @_linear_kernel_single_k(%arg0: i32, %arg1: i32, %arg2: memref<16x32xbf16, #tpu.memory_space<vmem>>, %arg3: memref<32x64xbf16, #tpu.memory_space<vmem>>, %arg4: memref<1x64xf32, #tpu.memory_space<vmem>>, %arg5: memref<16x64xf32, #tpu.memory_space<vmem>>) attributes {dimension_semantics = [#tpu.dimension_semantics<parallel>, #tpu.dimension_semantics<parallel>], iteration_bounds = array<i64: 1, 1>, scalar_prefetch = 0 : i64, scratch_operands = 0 : i64, tpu.core_type = #tpu.core_type<tc>, window_params = [{transform_indices = @transform_0, window_bounds = array<i64: 16, 32>}, {transform_indices = @transform_1, window_bounds = array<i64: 32, 64>}, {transform_indices = @transform_2, window_bounds = array<i64: 1, 64>}, {transform_indices = @transform_3, window_bounds = array<i64: 16, 64>}]} {
    %c0 = arith.constant 0 : index
    %c0_0 = arith.constant 0 : index
    %0 = vector.load %arg2[%c0, %c0_0] : memref<16x32xbf16, #tpu.memory_space<vmem>>, vector<16x32xbf16>
    %c0_1 = arith.constant 0 : index
    %c0_2 = arith.constant 0 : index
    %1 = vector.load %arg3[%c0_1, %c0_2] : memref<32x64xbf16, #tpu.memory_space<vmem>>, vector<32x64xbf16>
    %cst = arith.constant dense<0.000000e+00> : vector<16x64xf32>
    %2 = tpu.matmul %0, %1, %cst {dimension_numbers = #tpu.dot_dimension_numbers<[1], [0], [0], [1], [0, 0, 1, 1], [], []>} : vector<16x32xbf16>, vector<32x64xbf16>, vector<16x64xf32> -> vector<16x64xf32>
    %c0_3 = arith.constant 0 : index
    %c0_4 = arith.constant 0 : index
    %3 = vector.load %arg4[%c0_3, %c0_4] : memref<1x64xf32, #tpu.memory_space<vmem>>, vector<1x64xf32>
    %4 = vector.broadcast %3 : vector<1x64xf32> to vector<16x64xf32>
    %5 = arith.addf %2, %4 : vector<16x64xf32>
    %c0_5 = arith.constant 0 : index
    %c0_6 = arith.constant 0 : index
    %6 = vector.load %arg5[%c0_5, %c0_6] : memref<16x64xf32, #tpu.memory_space<vmem>>, vector<16x64xf32>
    tpu.vector_store %arg5[%c0_5, %c0_6], %5 {strides = array<i32>} : memref<16x64xf32, #tpu.memory_space<vmem>>, vector<16x64xf32>,
    return
  }
  func.func @transform_0(%arg0: i32, %arg1: i32) -> (i32, i32) {
    %c0_i32 = arith.constant 0 : i32
    %c0_i32_0 = arith.constant 0 : i32
    return %arg0, %c0_i32 : i32, i32
  }
  func.func @transform_1(%arg0: i32, %arg1: i32) -> (i32, i32) {
    %c0_i32 = arith.constant 0 : i32
    %c0_i32_0 = arith.constant 0 : i32
    return %c0_i32, %arg1 : i32, i32
  }
  func.func @transform_2(%arg0: i32, %arg1: i32) -> (i32, i32) {
    %c0_i32 = arith.constant 0 : i32
    %c0_i32_0 = arith.constant 0 : i32
    return %c0_i32, %arg1 : i32, i32
  }
  func.func @transform_3(%arg0: i32, %arg1: i32) -> (i32, i32) {
    %c0_i32 = arith.constant 0 : i32
    return %arg0, %arg1 : i32, i32
  }
}

</mosaic_0001>

<bundles_post_ra>
// kernel: tpu_custom_call.1
= control target key start
LH: loop header
LB: loop body
LE: loop exit
PB: predicated region body
PF: predicated region fallthrough
CT: control target
= control target key end

     0   :  { %8 = vsyncpa [#allocation3], 0  ;;  %s275_s0 = inlined_call_operand.hbm [shape: bf16[16,32], index: 0, kind: input, shape index: {}]   ;;  %s276_s1 = inlined_call_operand.hbm [shape: bf16[32,64], index: 1, kind: input, shape index: {}]   ;;  %s277_s2 = inlined_call_operand.vmem [shape: f32[1,64], index: 2, kind: input, shape index: {}]   ;;  %s278_s3 = inlined_call_operand.hbm [shape: f32[16,64], index: 3, kind: output, shape index: {}]  }
   0x1   :  { %9 = vsyncpa [#allocation6], 0 }
   0x2   :  { %10 = vsyncpa [#allocation4], 0  ;;  %s234_s12 = smov [#allocation2]  }
   0x3   :  { %s16_s13 = sshll.u32 %s234_s12, 4  ;;  %s17_s13 = int_to_ptr.vmem [resolvable:$true] %s16_s13 }
   0x4   :  { %s176_s14 = scalar_lea.vmem %s17_s13, 128  ;;  %p181_p1 = scmp.lt.s32.totalorder %s17_s13, %s17_s13 }
   0x5   :  { %p177_p0 = scmp.ne.s32.totalorder %s17_s13, %s176_s14  ;;  %p182_p2 = scmp.lt.s32.totalorder %s176_s14, %s176_s14 }
   0x7   :  { %p183_p3 = por %p182_p2, %p181_p1 }
   0x9   :  { %p184_p4 = pnand %p183_p3, %p177_p0 }
   0xb   :  { %187 = shalt.err (!%p184_p4)
}
   0xc   :  { %s235_s15 = smov 64   ;;  %s236_s16 = smov 4  }
   0xd   :  { %22 = dma.hbm_to_vmem [thread:$0]  %s275_s0, 128, %s17_s13, [#allocation3], %s235_s15, %s235_s15, %s236_s16  }
   0xe   :  { %s237_s19 = smov [#allocation5]  }
   0xf   :  { %s28_s20 = sshll.u32 %s237_s19, 4  ;;  %s29_s20 = int_to_ptr.vmem [resolvable:$true] %s28_s20 }
  0x10   :  { %s196_s21 = scalar_lea.vmem %s29_s20, 256  ;;  %p201_p6 = scmp.lt.s32.totalorder %s29_s20, %s29_s20 }
  0x11   :  { %p197_p5 = scmp.ne.s32.totalorder %s29_s20, %s196_s21  ;;  %p202_p7 = scmp.lt.s32.totalorder %s196_s21, %s196_s21 }
  0x13   :  { %p203_p8 = por %p202_p7, %p201_p6 }
  0x15   :  { %p204_p9 = pnand %p203_p8, %p197_p5 }
  0x17   :  { %207 = shalt.err (!%p204_p9)
}
  0x18   :  { %34 = dma.hbm_to_vmem [thread:$0]  %s276_s1, 256, %s29_s20, [#allocation6], %s235_s15, %s235_s15, %s236_s16  }
  0x19   :  { %228 = dma.done.wait [#allocation3], 128  }
  0x1a   :  { %229 = vsyncadd [#allocation3], 4294967168 }
  0x1b   :  { %230 = dma.done.wait [#allocation6], 256  }
  0x1c   :  { %231 = vsyncadd [#allocation6], 4294967040  ;;  %v238_v0 = vmov 0.0   ;;  %vm239_vm0 = vmmov 0   ;;  %v165_v1 = vld [vmem:[#allocation5 + $0x8] sm:$0xff]   ;;  %v166_v2 = vld [vmem:[#allocation5] sm:$0xff]  }
  0x1d   :  { %148 = vmatprep.subr.bf16.mxu0 %v238_v0  ;;  %152 = vmatprep.mubr.msk.bf16.mxu0 %vm239_vm0, %v238_v0  ;;  %v167_v3 = vld [vmem:[#allocation2] sm:$0xff]   ;;  %vm74_vm1 = vcmask 261120   ;;  %vm119_vm2 = vcmask 523264   ;;  %s240_s1 = smov [#allocation7]  }
  0x1e   :  { %149 = vmatpush3.bf16.msra.mxu0 %v165_v1  ;;  %v140_v4 = vld [vmem:[%s277_s2] ss:$0 sm:$0xff]  ;;  %s127_s25 = sshll.u32 %s240_s1, 4  ;;  %s128_s25 = int_to_ptr.vmem [resolvable:$true] %s127_s25 }
  0x1f   :  { %150 = vmatprep.subr.bf16.mxu0 %v238_v0  ;;  %s208_s26 = scalar_lea.vmem %s128_s25, 256  ;;  %p213_p11 = scmp.lt.s32.totalorder %s128_s25, %s128_s25 }
  0x20   :  { %p209_p10 = scmp.ne.s32.totalorder %s128_s25, %s208_s26  ;;  %p214_p12 = scmp.lt.s32.totalorder %s208_s26, %s208_s26 }
  0x22   :  { %151 = vmatpush3.bf16.msra.mxu0 %v166_v2  ;;  %p215_p13 = por %p214_p12, %p213_p11 }
  0x24   :  { %p216_p0 = pnand %p215_p13, %p209_p10 }
  0x25   :  { %153 = vmatmul.mubr.msk.bf16.vlgmr.msra.gmra.mxu0 %vm74_vm1, %v167_v3 }
  0xe5   :  { %v112_v5 = vpop.f32.mrf.mxu0 }
  0xe6   :  { %v113_v6 = vadd.f32 %v140_v4, %v112_v5 }
  0xe7   :  { %v154_v7 = vpop.f32.mrf.mxu0 }
  0xe8   :  { %120 = vst.msk [vmem:[#allocation7] sm:$0xff] %vm119_vm2, %v113_v6 }
  0xe9   :  { %v115_v8 = vpop.f32.mrf.mxu0 }
  0xea   :  { %v116_v9 = vadd.f32 %v140_v4, %v115_v8 }
  0xeb   :  { %v155_v10 = vpop.f32.mrf.mxu0 }
  0xec   :  { %121 = vst.msk [vmem:[#allocation7 + $0x8] sm:$0xff] %vm119_vm2, %v116_v9 }
  0xed   :  { %219 = shalt.err (!%p216_p0)
}
  0xee   :  { %s241_s2 = smov 128   ;;  %s242_s27 = smov 8  }
  0xef   :  { %133 = dma.vmem_to_hbm [thread:$0]  %s128_s25, 256, %s278_s3, [#allocation4], %s241_s2, %s241_s2, %s242_s27  }
  0xf0   :  { %232 = dma.done.wait [#allocation4], 256  }
  0xf1   :  { %233 = vsyncadd [#allocation4], 4294967040 }
  0xf2   :  { %137 = vsyncpa [#allocation3], 1 }
  0xf3   :  { %138 = vsyncpa [#allocation6], 1 }
  0xf4   :  { %139 = vsyncpa [#allocation4], 1 }

</bundles_post_ra>
